<compile_context>
chip_gen: v6e
topology: v6e:2x2x1
jax: 0.10.0
libtpu: 0.0.40
codegen_flags: <defaults>
</compile_context>

<pallas_src>
import functools

import jax
import jax.numpy as jnp
from jax import lax
from jax.experimental import pallas as pl
from jax.experimental.pallas import tpu as pltpu


def _round_up(x, m):
    return ((x + m - 1) // m) * m


def _layernorm(x, gamma, beta, eps=1e-5):
    # x: (R, d); gamma/beta (1, d). Stats in f32 (matches torch eps=1e-5).
    mean = jnp.mean(x, axis=-1, keepdims=True)
    var = jnp.mean((x - mean) ** 2, axis=-1, keepdims=True)
    return (x - mean) * lax.rsqrt(var + eps) * gamma + beta


def cross_attn_kernel(x_ref, ctx_ref, wq_ref, wkv_ref, w1_ref, w2_ref, ws_ref,
                      pp_ref, o_ref,
                      *, n_heads, d_head, d_in, d_ctx, d_expand, d_out_p, scale,
                      block_b, n_q, n_kv, mxu_dtype):
    Bt, N, M, H = block_b, n_q, n_kv, n_heads
    kdim = d_head * H
    act_dtype = jnp.float32 if mxu_dtype is None else mxu_dtype

    def mm(a, b):
        # 2-D matmul, f32 accumulation; optional narrow MXU operands.
        # Weights already arrive in mxu_dtype (wrapper pre-cast) -> no-op cast.
        if mxu_dtype is not None:
            a, b = a.astype(mxu_dtype), b.astype(mxu_dtype)
        return jnp.dot(a, b, preferred_element_type=jnp.float32)

    def bmm(a, b, contract):
        # dot_general batched over folded-batch dim 0, contracting
        # (lhs_dim, rhs_dim) -- no explicit k/v transpose materialized.
        if mxu_dtype is not None:
            a, b = a.astype(mxu_dtype), b.astype(mxu_dtype)
        return lax.dot_general(
            a, b, (((contract[0],), (contract[1],)), ((0,), (0,))),
            preferred_element_type=jnp.float32)

    # Tiny (1, d) params packed as rows of a single f32 input (static slices).
    gq = pp_ref[0:1, :d_in]
    bq_ln = pp_ref[1:2, :d_in]
    bq = pp_ref[2:3, :kdim]
    gkv = pp_ref[3:4, :d_ctx]
    bkv_ln = pp_ref[4:5, :d_ctx]
    bkv = pp_ref[5:6, :(d_head + d_in) * H]
    bm = pp_ref[6:7, :d_in]
    gf = pp_ref[7:8, :d_in]
    bf_ln = pp_ref[8:9, :d_in]
    b1 = pp_ref[9:10, :d_expand]
    b2 = pp_ref[10:11, :d_out_p]
    bs = pp_ref[11:12, :d_out_p]

    # Flatten the folded batch into rows for all row-wise stages.
    # (Bt, N, d) -> (Bt*N, d) is a leading-dim merge at a sublane-tile boundary
    # (N, M multiples of 8, asserted in the wrapper) -> layout no-op.
    x = x_ref[...].reshape(Bt * N, d_in).astype(jnp.float32)
    ctx = ctx_ref[...].reshape(Bt * M, d_ctx).astype(jnp.float32)

    # q = Linear(LayerNorm(x)) ; kv = Linear(LayerNorm(context))
    q = mm(_layernorm(x, gq, bq_ln), wq_ref[...]) + bq
    kv = mm(_layernorm(ctx, gkv, bkv_ln), wkv_ref[...]) + bkv
    k = kv[:, :kdim]          # (Rc, H*d_head)
    v = kv[:, kdim:]          # (Rc, H*d_in) -- already routed through wm per head

    # Per-head attention, batched over the folded batch.  The merge projection
    # was folded into wkv in the wrapper, so each head's context just sums.
    merge_acc = jnp.zeros((Bt * N, d_in), jnp.float32)
    for h in range(H):  # TODO(synk): lax.fori_loop(unroll=True) for large H.
        q_h = q[:, h * d_head:(h + 1) * d_head].reshape(Bt, N, d_head)
        k_h = k[:, h * d_head:(h + 1) * d_head].reshape(Bt, M, d_head)
        v_h = v[:, h * d_in:(h + 1) * d_in].reshape(Bt, M, d_in)
        s = bmm(q_h, k_h, (2, 2)) * scale                     # (Bt, N, M)
        s = s - jnp.max(s, axis=-1, keepdims=True)
        p = jnp.exp(s.astype(act_dtype)).astype(jnp.float32)  # EUP in act_dtype
        p = p * pl.reciprocal(jnp.sum(p, axis=-1, keepdims=True), approx=True)
        # TODO(synk): attention dropout omitted (eval/inference semantics)
        merge_acc = merge_acc + bmm(p, v_h, (2, 1)).reshape(Bt * N, d_in)
    xm = x + merge_acc + bm                                   # (R, d_in)

    # ff: LayerNorm -> Linear -> Swish -> (Dropout) -> Linear
    h1 = mm(_layernorm(xm, gf, bf_ln), w1_ref[...]) + b1
    h1 = h1 * jax.nn.sigmoid(h1.astype(act_dtype)).astype(jnp.float32)  # Swish
    # TODO(synk): FFN dropout omitted (eval/inference semantics)
    ff_out = mm(h1, w2_ref[...]) + b2                         # (R, d_out_p)

    shortcut = mm(xm, ws_ref[...]) + bs                       # (R, d_out_p)
    # Lane-dense 2-D output slab (d_out_p is a multiple of 128): unmasked stores.
    o_ref[...] = (ff_out + shortcut).astype(o_ref.dtype)


def _pick_block_b(B, N, *, target_rows=512, max_rows=1024, min_grid=1):
    """How many batch elements to fold per grid step.

    v5e/v6e (single TC): a long grid buys nothing -> keep the defaults (fold up
    to ~512-1024 rows to amortize the ~0.35us/step overhead and feed the MXU a
    tall LHS).  v7x (2 TCs, 64 MiB VMEM): call with min_grid=2 and a smaller
    max_rows so both cores get work and the tile fits the scoped VMEM.
    """
    divisors = [d for d in range(1, B + 1) if B % d == 0]
    fit = [d for d in divisors if d * N <= max_rows] or [1]
    grid_ok = [d for d in fit if B // d >= min_grid] or fit
    reach = [d for d in grid_ok if d * N >= target_rows]
    return min(reach) if reach else max(grid_ok)


def cross_attn_block(x, context, params, *, n_heads, d_head, block_b=None,
                     mxu_dtype=None, target_rows=512, max_rows=1024, min_grid=1):
    B, N, d_in = x.shape
    Bc, M, d_ctx = context.shape
    assert Bc == B
    # Guard the "reshape is a layout no-op" assumption (sublane tile = 8 for f32).
    assert N % 8 == 0 and M % 8 == 0, (N, M)
    H = n_heads
    kdim = d_head * H
    d_expand = params["w1"].shape[1]
    d_out = params["w2"].shape[1]
    d_out_p = _round_up(d_out, 128)
    scale = float(d_head) ** (-0.5)

    Bt = (_pick_block_b(B, N, target_rows=target_rows, max_rows=max_rows,
                        min_grid=min_grid) if block_b is None else block_b)
    assert B % Bt == 0, (B, Bt)

    f32 = jnp.float32
    wq = params["wq"].astype(f32)
    wkv = params["wkv"].astype(f32)
    bkv = params["bkv"].reshape(1, -1).astype(f32)
    wm = params["wm"].astype(f32)
    w1 = params["w1"].astype(f32)

    # --- Fold the merge projection into the v-columns of the kv projection ---
    # v'_h = LN(ctx) @ (Wv_h @ wm_h) + (bv_h @ wm_h)  ==  (original v_h) @ wm_h
    # (exact; no reliance on softmax row sums).  bm is still applied in-kernel.
    wkv_v = wkv[:, kdim:].reshape(d_ctx, H, d_in)
    bkv_v = bkv[:, kdim:].reshape(1, H, d_in)
    wm_h = wm.reshape(H, d_in, d_in)
    wkv_v_f = jnp.einsum("chi,hio->cho", wkv_v, wm_h).reshape(d_ctx, H * d_in)
    bkv_v_f = jnp.einsum("bhi,hio->bho", bkv_v, wm_h).reshape(1, H * d_in)
    wkv_f = jnp.concatenate([wkv[:, :kdim], wkv_v_f], axis=1)
    bkv_f = jnp.concatenate([bkv[:, :kdim], bkv_v_f], axis=1)

    # --- Pad the output projections to a lane-dense (multiple of 128) width ---
    def pad_cols(w, width):
        w = jnp.asarray(w, f32)
        return jnp.pad(w, ((0, 0), (0, width - w.shape[1])))
    w2_p = pad_cols(params["w2"], d_out_p)
    ws_p = pad_cols(params["ws"], d_out_p)
    b2_p = pad_cols(params["b2"].reshape(1, -1), d_out_p)
    bs_p = pad_cols(params["bs"].reshape(1, -1), d_out_p)

    # --- Pack the tiny (1, d) params into one (12, Wmax) f32 input ------------
    small = [params["gq"], params["bq_ln"], params["bq"],
             params["gkv"], params["bkv_ln"], bkv_f,
             params["bm"], params["gf"], params["bf_ln"],
             params["b1"], b2_p, bs_p]
    small = [jnp.asarray(s, f32).reshape(1, -1) for s in small]
    wmax = max(s.shape[1] for s in small)
    packed = jnp.concatenate(
        [jnp.pad(s, ((0, 0), (0, wmax - s.shape[1]))) for s in small], axis=0)

    weights = [wq, wkv_f, w1, w2_p, ws_p]
    if mxu_dtype is not None:
        # One-time pre-cast: halves weight DMA bytes / VMEM residency on v6e/v7x.
        weights = [w.astype(mxu_dtype) for w in weights]

    kernel = functools.partial(
        cross_attn_kernel, n_heads=H, d_head=d_head, d_in=d_in, d_ctx=d_ctx,
        d_expand=d_expand, d_out_p=d_out_p, scale=scale, block_b=Bt, n_q=N,
        n_kv=M, mxu_dtype=mxu_dtype)

    def full_spec(arr):
        nd = arr.ndim
        # Constant block index across the grid -> fetched once by the pipeline.
        # TODO(synk): pipeline_mode=pl.Buffered(1) once verified on target jaxlib.
        return pl.BlockSpec(arr.shape, lambda b, _nd=nd: (0,) * _nd)

    # --- Compiler hints: scoped-VMEM limit and cost estimate ------------------
    rows, rows_c = Bt * N, Bt * M
    w_bytes = sum(int(w.size) * w.dtype.itemsize for w in weights)
    w_bytes += int(packed.size) * 4
    io_bytes = 2 * 4 * (rows * d_in + rows_c * d_ctx + rows * d_out_p)  # 2x bufs
    inter_bytes = 4 * (rows * (4 * d_in + kdim + d_expand + 2 * d_out_p)
                       + rows_c * (kdim + H * d_in)
                       + Bt * N * M * 3)
    vmem_limit = int(min(64 * 2 ** 20,
                         max(32 * 2 ** 20, 2 * (w_bytes + io_bytes + inter_bytes))))

    R, Rc = B * N, B * M
    flops = 2 * (R * d_in * kdim
                 + Rc * d_ctx * (kdim + H * d_in)
                 + B * H * N * M * (d_head + d_in)
                 + R * d_in * d_expand
                 + R * d_expand * d_out_p
                 + R * d_in * d_out_p)
    transcendentals = R * d_expand + B * H * N * M + 3 * (R + Rc)
    bytes_accessed = int(x.nbytes + context.nbytes + w_bytes
                         + R * d_out_p * x.dtype.itemsize)

    out = pl.pallas_call(
        kernel,
        out_shape=jax.ShapeDtypeStruct((B * N, d_out_p), x.dtype),
        grid=(B // Bt,),
        in_specs=[pl.BlockSpec((Bt, N, d_in), lambda b: (b, 0, 0)),
                  pl.BlockSpec((Bt, M, d_ctx), lambda b: (b, 0, 0)),
                  *[full_spec(w) for w in weights],
                  full_spec(packed)],
        out_specs=pl.BlockSpec((Bt * N, d_out_p), lambda b: (b, 0)),
        compiler_params=pltpu.CompilerParams(
            dimension_semantics=("parallel",),
            vmem_limit_bytes=vmem_limit),
        cost_estimate=pl.CostEstimate(flops=int(flops),
                                      transcendentals=int(transcendentals),
                                      bytes_accessed=bytes_accessed),
    )(x, context, *weights, packed)

    # Drop the lane padding and restore (B, N, d_out) (metadata reshape in XLA).
    return out[:, :d_out].reshape(B, N, d_out)


def reference_forward(x, context, params, *, n_heads, d_head):
    """Pure-JAX reference of the PyTorch forward (eval mode)."""
    B, N, d_in = x.shape
    scale = float(d_head) ** (-0.5)
    q = _layernorm(x, params["gq"][0], params["bq_ln"][0]) @ params["wq"] + params["bq"][0]
    kv = _layernorm(context, params["gkv"][0], params["bkv_ln"][0]) @ params["wkv"] + params["bkv"][0]
    k = kv[..., : d_head * n_heads]
    v = kv[..., d_head * n_heads:]
    qh = q.reshape(B, N, n_heads, d_head).transpose(0, 2, 1, 3)
    kh = k.reshape(B, -1, n_heads, d_head).transpose(0, 2, 1, 3)
    vh = v.reshape(B, -1, n_heads, d_in).transpose(0, 2, 1, 3)
    attn = jnp.einsum("bhnc,bhmc->bhnm", qh, kh) * scale
    attn = jax.nn.softmax(attn, axis=-1)
    out = jnp.einsum("bhnm,bhmc->bhnc", attn, vh)
    out = out.transpose(0, 2, 1, 3).reshape(B, N, n_heads * d_in)
    xm = x + out @ params["wm"] + params["bm"][0]
    h1 = _layernorm(xm, params["gf"][0], params["bf_ln"][0]) @ params["w1"] + params["b1"][0]
    h1 = h1 * jax.nn.sigmoid(h1)
    ff = h1 @ params["w2"] + params["b2"][0]
    return ff + xm @ params["ws"] + params["bs"][0]


if __name__ == "__main__":
    # Small, CrossAttnBlock-consistent shapes.
    B, N, M = 2, 8, 8
    d_in, d_context, d_head, d_expand, d_out, H = 32, 16, 8, 64, 16, 2

    key = jax.random.PRNGKey(0)
    ks = jax.random.split(key, 24)

    def w(k, shape, s=0.1):
        return (s * jax.random.normal(k, shape)).astype(jnp.float32)

    # NOTE: the PyTorch __init__ zero-inits merge_head_proj and ff[-1]; here all
    # weights get small random values so the full compute path is exercised.
    params = dict(
        gq=jnp.ones((1, d_in), jnp.float32),        bq_ln=jnp.zeros((1, d_in), jnp.float32),
        wq=w(ks[0], (d_in, d_head * H)),            bq=w(ks[1], (1, d_head * H)),
        gkv=jnp.ones((1, d_context), jnp.float32),  bkv_ln=jnp.zeros((1, d_context), jnp.float32),
        wkv=w(ks[2], (d_context, (d_head + d_in) * H)),
        bkv=w(ks[3], (1, (d_head + d_in) * H)),
        wm=w(ks[4], (d_in * H, d_in)),              bm=w(ks[5], (1, d_in)),
        gf=jnp.ones((1, d_in), jnp.float32),        bf_ln=jnp.zeros((1, d_in), jnp.float32),
        w1=w(ks[6], (d_in, d_expand)),              b1=w(ks[7], (1, d_expand)),
        w2=w(ks[8], (d_expand, d_out)),             b2=w(ks[9], (1, d_out)),
        ws=w(ks[10], (d_in, d_out)),                bs=w(ks[11], (1, d_out)),
    )

    x = jax.random.normal(ks[12], (B, N, d_in), jnp.float32)
    context = jax.random.normal(ks[13], (B, M, d_context), jnp.float32)

    ref = reference_forward(x, context, params, n_heads=H, d_head=d_head)

    # Full-precision MXU path (v5e-safe default).
    out = cross_attn_block(x, context, params, n_heads=H, d_head=d_head)
    out = jax.block_until_ready(out)
    assert out.shape == (B, N, d_out), out.shape
    assert jnp.allclose(out, ref, atol=2e-2, rtol=2e-2), float(jnp.max(jnp.abs(out - ref)))

    # bf16 MXU-operand path (recommended default on v6e/v7x); f32 accumulation.
    out_bf16 = cross_attn_block(x, context, params, n_heads=H, d_head=d_head,
                                mxu_dtype=jnp.bfloat16)
    out_bf16 = jax.block_until_ready(out_bf16)
    assert jnp.allclose(out_bf16, ref, atol=1e-1, rtol=1e-1), \
        float(jnp.max(jnp.abs(out_bf16 - ref)))

    print("KERNEL_OK")
</pallas_src>

<mosaic_0001>
module attributes {stable_mosaic.version = 11 : i64} {
  func.func @cross_attn_kernel(%arg0: i32, %arg1: memref<2x8x32xf32, #tpu.memory_space<vmem>>, %arg2: memref<2x8x16xf32, #tpu.memory_space<vmem>>, %arg3: memref<32x16xf32, #tpu.memory_space<vmem>>, %arg4: memref<16x80xf32, #tpu.memory_space<vmem>>, %arg5: memref<32x64xf32, #tpu.memory_space<vmem>>, %arg6: memref<64x128xf32, #tpu.memory_space<vmem>>, %arg7: memref<32x128xf32, #tpu.memory_space<vmem>>, %arg8: memref<12x128xf32, #tpu.memory_space<vmem>>, %arg9: memref<16x128xf32, #tpu.memory_space<vmem>>) attributes {dimension_semantics = [#tpu.dimension_semantics<parallel>], iteration_bounds = array<i64: 1>, scalar_prefetch = 0 : i64, scratch_operands = 0 : i64, tpu.core_type = #tpu.core_type<tc>, window_params = [{transform_indices = @transform_0, window_bounds = array<i64: 2, 8, 32>}, {transform_indices = @transform_1, window_bounds = array<i64: 2, 8, 16>}, {pipeline_mode = #tpu.pipeline_mode<synchronous>, transform_indices = @transform_2, window_bounds = array<i64: 32, 16>}, {pipeline_mode = #tpu.pipeline_mode<synchronous>, transform_indices = @transform_3, window_bounds = array<i64: 16, 80>}, {pipeline_mode = #tpu.pipeline_mode<synchronous>, transform_indices = @transform_4, window_bounds = array<i64: 32, 64>}, {pipeline_mode = #tpu.pipeline_mode<synchronous>, transform_indices = @transform_5, window_bounds = array<i64: 64, 128>}, {pipeline_mode = #tpu.pipeline_mode<synchronous>, transform_indices = @transform_6, window_bounds = array<i64: 32, 128>}, {pipeline_mode = #tpu.pipeline_mode<synchronous>, transform_indices = @transform_7, window_bounds = array<i64: 12, 128>}, {transform_indices = @transform_8, window_bounds = array<i64: 16, 128>}]} {
    %c0 = arith.constant 0 : index
    %c0_0 = arith.constant 0 : index
    %0 = vector.load %arg8[%c0, %c0_0] : memref<12x128xf32, #tpu.memory_space<vmem>>, vector<1x32xf32>
    %c1 = arith.constant 1 : index
    %c0_1 = arith.constant 0 : index
    %1 = vector.load %arg8[%c1, %c0_1] : memref<12x128xf32, #tpu.memory_space<vmem>>, vector<1x32xf32>
    %c2 = arith.constant 2 : index
    %c0_2 = arith.constant 0 : index
    %2 = vector.load %arg8[%c2, %c0_2] : memref<12x128xf32, #tpu.memory_space<vmem>>, vector<1x16xf32>
    %c3 = arith.constant 3 : index
    %c0_3 = arith.constant 0 : index
    %3 = vector.load %arg8[%c3, %c0_3] : memref<12x128xf32, #tpu.memory_space<vmem>>, vector<1x16xf32>
    %c4 = arith.constant 4 : index
    %c0_4 = arith.constant 0 : index
    %4 = vector.load %arg8[%c4, %c0_4] : memref<12x128xf32, #tpu.memory_space<vmem>>, vector<1x16xf32>
    %c5 = arith.constant 5 : index
    %c0_5 = arith.constant 0 : index
    %5 = vector.load %arg8[%c5, %c0_5] : memref<12x128xf32, #tpu.memory_space<vmem>>, vector<1x80xf32>
    %c6 = arith.constant 6 : index
    %c0_6 = arith.constant 0 : index
    %6 = vector.load %arg8[%c6, %c0_6] : memref<12x128xf32, #tpu.memory_space<vmem>>, vector<1x32xf32>
    %c7 = arith.constant 7 : index
    %c0_7 = arith.constant 0 : index
    %7 = vector.load %arg8[%c7, %c0_7] : memref<12x128xf32, #tpu.memory_space<vmem>>, vector<1x32xf32>
    %c8 = arith.constant 8 : index
    %c0_8 = arith.constant 0 : index
    %8 = vector.load %arg8[%c8, %c0_8] : memref<12x128xf32, #tpu.memory_space<vmem>>, vector<1x32xf32>
    %c9 = arith.constant 9 : index
    %c0_9 = arith.constant 0 : index
    %9 = vector.load %arg8[%c9, %c0_9] : memref<12x128xf32, #tpu.memory_space<vmem>>, vector<1x64xf32>
    %c10 = arith.constant 10 : index
    %c0_10 = arith.constant 0 : index
    %10 = vector.load %arg8[%c10, %c0_10] : memref<12x128xf32, #tpu.memory_space<vmem>>, vector<1x128xf32>
    %c11 = arith.constant 11 : index
    %c0_11 = arith.constant 0 : index
    %11 = vector.load %arg8[%c11, %c0_11] : memref<12x128xf32, #tpu.memory_space<vmem>>, vector<1x128xf32>
    %c0_12 = arith.constant 0 : index
    %c0_13 = arith.constant 0 : index
    %c0_14 = arith.constant 0 : index
    %12 = vector.load %arg1[%c0_12, %c0_13, %c0_14] : memref<2x8x32xf32, #tpu.memory_space<vmem>>, vector<2x8x32xf32>
    %13 = vector.shape_cast %12 : vector<2x8x32xf32> to vector<16x32xf32>
    %c0_15 = arith.constant 0 : index
    %c0_16 = arith.constant 0 : index
    %c0_17 = arith.constant 0 : index
    %14 = vector.load %arg2[%c0_15, %c0_16, %c0_17] : memref<2x8x16xf32, #tpu.memory_space<vmem>>, vector<2x8x16xf32>
    %15 = vector.shape_cast %14 : vector<2x8x16xf32> to vector<16x16xf32>
    %cst = arith.constant dense<0.000000e+00> : vector<16xf32>
    %16 = vector.multi_reduction <add>, %13, %cst [1] : vector<16x32xf32> to vector<16xf32>
    %17 = vector.shape_cast %16 : vector<16xf32> to vector<16x1xf32>
    %cst_18 = arith.constant 3.200000e+01 : f32
    %18 = vector.broadcast %cst_18 : f32 to vector<16x1xf32>
    %19 = arith.divf %17, %18 : vector<16x1xf32>
    %20 = vector.broadcast %19 : vector<16x1xf32> to vector<16x32xf32>
    %21 = arith.subf %13, %20 : vector<16x32xf32>
    %22 = arith.mulf %21, %21 : vector<16x32xf32>
    %cst_19 = arith.constant dense<0.000000e+00> : vector<16xf32>
    %23 = vector.multi_reduction <add>, %22, %cst_19 [1] : vector<16x32xf32> to vector<16xf32>
    %24 = vector.shape_cast %23 : vector<16xf32> to vector<16x1xf32>
    %cst_20 = arith.constant 3.200000e+01 : f32
    %25 = vector.broadcast %cst_20 : f32 to vector<16x1xf32>
    %26 = arith.divf %24, %25 : vector<16x1xf32>
    %27 = vector.broadcast %19 : vector<16x1xf32> to vector<16x32xf32>
    %28 = arith.subf %13, %27 : vector<16x32xf32>
    %cst_21 = arith.constant 9.99999974E-6 : f32
    %29 = vector.broadcast %cst_21 : f32 to vector<16x1xf32>
    %30 = arith.addf %26, %29 : vector<16x1xf32>
    %31 = math.rsqrt %30 : vector<16x1xf32>
    %32 = vector.broadcast %31 : vector<16x1xf32> to vector<16x32xf32>
    %33 = arith.mulf %28, %32 : vector<16x32xf32>
    %34 = vector.broadcast %0 : vector<1x32xf32> to vector<16x32xf32>
    %35 = arith.mulf %33, %34 : vector<16x32xf32>
    %36 = vector.broadcast %1 : vector<1x32xf32> to vector<16x32xf32>
    %37 = arith.addf %35, %36 : vector<16x32xf32>
    %c0_22 = arith.constant 0 : index
    %c0_23 = arith.constant 0 : index
    %38 = vector.load %arg3[%c0_22, %c0_23] : memref<32x16xf32, #tpu.memory_space<vmem>>, vector<32x16xf32>
    %cst_24 = arith.constant dense<0.000000e+00> : vector<16x16xf32>
    %39 = tpu.matmul %37, %38, %cst_24 {dimension_numbers = #tpu.dot_dimension_numbers<[1], [0], [0], [1], [0, 0, 1, 1], [], []>} : vector<16x32xf32>, vector<32x16xf32>, vector<16x16xf32> -> vector<16x16xf32>
    %40 = vector.broadcast %2 : vector<1x16xf32> to vector<16x16xf32>
    %41 = arith.addf %39, %40 : vector<16x16xf32>
    %cst_25 = arith.constant dense<0.000000e+00> : vector<16xf32>
    %42 = vector.multi_reduction <add>, %15, %cst_25 [1] : vector<16x16xf32> to vector<16xf32>
    %43 = vector.shape_cast %42 : vector<16xf32> to vector<16x1xf32>
    %cst_26 = arith.constant 1.600000e+01 : f32
    %44 = vector.broadcast %cst_26 : f32 to vector<16x1xf32>
    %45 = arith.divf %43, %44 : vector<16x1xf32>
    %46 = vector.broadcast %45 : vector<16x1xf32> to vector<16x16xf32>
    %47 = arith.subf %15, %46 : vector<16x16xf32>
    %48 = arith.mulf %47, %47 : vector<16x16xf32>
    %cst_27 = arith.constant dense<0.000000e+00> : vector<16xf32>
    %49 = vector.multi_reduction <add>, %48, %cst_27 [1] : vector<16x16xf32> to vector<16xf32>
    %50 = vector.shape_cast %49 : vector<16xf32> to vector<16x1xf32>
    %cst_28 = arith.constant 1.600000e+01 : f32
    %51 = vector.broadcast %cst_28 : f32 to vector<16x1xf32>
    %52 = arith.divf %50, %51 : vector<16x1xf32>
    %53 = vector.broadcast %45 : vector<16x1xf32> to vector<16x16xf32>
    %54 = arith.subf %15, %53 : vector<16x16xf32>
    %cst_29 = arith.constant 9.99999974E-6 : f32
    %55 = vector.broadcast %cst_29 : f32 to vector<16x1xf32>
    %56 = arith.addf %52, %55 : vector<16x1xf32>
    %57 = math.rsqrt %56 : vector<16x1xf32>
    %58 = vector.broadcast %57 : vector<16x1xf32> to vector<16x16xf32>
    %59 = arith.mulf %54, %58 : vector<16x16xf32>
    %60 = vector.broadcast %3 : vector<1x16xf32> to vector<16x16xf32>
    %61 = arith.mulf %59, %60 : vector<16x16xf32>
    %62 = vector.broadcast %4 : vector<1x16xf32> to vector<16x16xf32>
    %63 = arith.addf %61, %62 : vector<16x16xf32>
    %c0_30 = arith.constant 0 : index
    %c0_31 = arith.constant 0 : index
    %64 = vector.load %arg4[%c0_30, %c0_31] : memref<16x80xf32, #tpu.memory_space<vmem>>, vector<16x80xf32>
    %cst_32 = arith.constant dense<0.000000e+00> : vector<16x80xf32>
    %65 = tpu.matmul %63, %64, %cst_32 {dimension_numbers = #tpu.dot_dimension_numbers<[1], [0], [0], [1], [0, 0, 1, 1], [], []>} : vector<16x16xf32>, vector<16x80xf32>, vector<16x80xf32> -> vector<16x80xf32>
    %66 = vector.broadcast %5 : vector<1x80xf32> to vector<16x80xf32>
    %67 = arith.addf %65, %66 : vector<16x80xf32>
    %68 = vector.extract_strided_slice %67 {offsets = [0, 0], sizes = [16, 16], strides = [1, 1]} : vector<16x80xf32> to vector<16x16xf32>
    %69 = vector.extract_strided_slice %67 {offsets = [0, 16], sizes = [16, 64], strides = [1, 1]} : vector<16x80xf32> to vector<16x64xf32>
    %cst_33 = arith.constant 0.000000e+00 : f32
    %70 = vector.broadcast %cst_33 : f32 to vector<16x32xf32>
    %71 = vector.extract_strided_slice %41 {offsets = [0, 0], sizes = [16, 8], strides = [1, 1]} : vector<16x16xf32> to vector<16x8xf32>
    %72 = vector.shape_cast %71 : vector<16x8xf32> to vector<2x8x8xf32>
    %73 = vector.extract_strided_slice %68 {offsets = [0, 0], sizes = [16, 8], strides = [1, 1]} : vector<16x16xf32> to vector<16x8xf32>
    %74 = vector.shape_cast %73 : vector<16x8xf32> to vector<2x8x8xf32>
    %75 = vector.extract_strided_slice %69 {offsets = [0, 0], sizes = [16, 32], strides = [1, 1]} : vector<16x64xf32> to vector<16x32xf32>
    %76 = vector.shape_cast %75 : vector<16x32xf32> to vector<2x8x32xf32>
    %cst_34 = arith.constant dense<0.000000e+00> : vector<2x8x8xf32>
    %77 = tpu.matmul %72, %74, %cst_34 {dimension_numbers = #tpu.dot_dimension_numbers<[2], [2], [1], [1], [0, 0, 0, 1, 1, 1], [0], [0]>} : vector<2x8x8xf32>, vector<2x8x8xf32>, vector<2x8x8xf32> -> vector<2x8x8xf32>
    %cst_35 = arith.constant 0.353553385 : f32
    %78 = vector.broadcast %cst_35 : f32 to vector<2x8x8xf32>
    %79 = arith.mulf %77, %78 : vector<2x8x8xf32>
    %cst_36 = arith.constant dense<0xFF800000> : vector<2x8xf32>
    %80 = vector.multi_reduction <maximumf>, %79, %cst_36 [2] : vector<2x8x8xf32> to vector<2x8xf32>
    %81 = vector.shape_cast %80 : vector<2x8xf32> to vector<2x8x1xf32>
    %82 = vector.broadcast %81 : vector<2x8x1xf32> to vector<2x8x8xf32>
    %83 = arith.subf %79, %82 : vector<2x8x8xf32>
    %84 = math.exp %83 : vector<2x8x8xf32>
    %cst_37 = arith.constant dense<0.000000e+00> : vector<2x8xf32>
    %85 = vector.multi_reduction <add>, %84, %cst_37 [2] : vector<2x8x8xf32> to vector<2x8xf32>
    %86 = vector.shape_cast %85 : vector<2x8xf32> to vector<2x8x1xf32>
    %87 = tpu.reciprocal %86 {approx = true} : vector<2x8x1xf32> -> vector<2x8x1xf32>
    %88 = vector.broadcast %87 : vector<2x8x1xf32> to vector<2x8x8xf32>
    %89 = arith.mulf %84, %88 : vector<2x8x8xf32>
    %cst_38 = arith.constant dense<0.000000e+00> : vector<2x8x32xf32>
    %90 = tpu.matmul %89, %76, %cst_38 {dimension_numbers = #tpu.dot_dimension_numbers<[2], [1], [1], [2], [0, 0, 0, 1, 1, 2], [0], [0]>} : vector<2x8x8xf32>, vector<2x8x32xf32>, vector<2x8x32xf32> -> vector<2x8x32xf32>
    %91 = vector.shape_cast %90 : vector<2x8x32xf32> to vector<16x32xf32>
    %92 = arith.addf %70, %91 : vector<16x32xf32>
    %93 = vector.extract_strided_slice %41 {offsets = [0, 8], sizes = [16, 8], strides = [1, 1]} : vector<16x16xf32> to vector<16x8xf32>
    %94 = vector.shape_cast %93 : vector<16x8xf32> to vector<2x8x8xf32>
    %95 = vector.extract_strided_slice %68 {offsets = [0, 8], sizes = [16, 8], strides = [1, 1]} : vector<16x16xf32> to vector<16x8xf32>
    %96 = vector.shape_cast %95 : vector<16x8xf32> to vector<2x8x8xf32>
    %97 = vector.extract_strided_slice %69 {offsets = [0, 32], sizes = [16, 32], strides = [1, 1]} : vector<16x64xf32> to vector<16x32xf32>
    %98 = vector.shape_cast %97 : vector<16x32xf32> to vector<2x8x32xf32>
    %cst_39 = arith.constant dense<0.000000e+00> : vector<2x8x8xf32>
    %99 = tpu.matmul %94, %96, %cst_39 {dimension_numbers = #tpu.dot_dimension_numbers<[2], [2], [1], [1], [0, 0, 0, 1, 1, 1], [0], [0]>} : vector<2x8x8xf32>, vector<2x8x8xf32>, vector<2x8x8xf32> -> vector<2x8x8xf32>
    %cst_40 = arith.constant 0.353553385 : f32
    %100 = vector.broadcast %cst_40 : f32 to vector<2x8x8xf32>
    %101 = arith.mulf %99, %100 : vector<2x8x8xf32>
    %cst_41 = arith.constant dense<0xFF800000> : vector<2x8xf32>
    %102 = vector.multi_reduction <maximumf>, %101, %cst_41 [2] : vector<2x8x8xf32> to vector<2x8xf32>
    %103 = vector.shape_cast %102 : vector<2x8xf32> to vector<2x8x1xf32>
    %104 = vector.broadcast %103 : vector<2x8x1xf32> to vector<2x8x8xf32>
    %105 = arith.subf %101, %104 : vector<2x8x8xf32>
    %106 = math.exp %105 : vector<2x8x8xf32>
    %cst_42 = arith.constant dense<0.000000e+00> : vector<2x8xf32>
    %107 = vector.multi_reduction <add>, %106, %cst_42 [2] : vector<2x8x8xf32> to vector<2x8xf32>
    %108 = vector.shape_cast %107 : vector<2x8xf32> to vector<2x8x1xf32>
    %109 = tpu.reciprocal %108 {approx = true} : vector<2x8x1xf32> -> vector<2x8x1xf32>
    %110 = vector.broadcast %109 : vector<2x8x1xf32> to vector<2x8x8xf32>
    %111 = arith.mulf %106, %110 : vector<2x8x8xf32>
    %cst_43 = arith.constant dense<0.000000e+00> : vector<2x8x32xf32>
    %112 = tpu.matmul %111, %98, %cst_43 {dimension_numbers = #tpu.dot_dimension_numbers<[2], [1], [1], [2], [0, 0, 0, 1, 1, 2], [0], [0]>} : vector<2x8x8xf32>, vector<2x8x32xf32>, vector<2x8x32xf32> -> vector<2x8x32xf32>
    %113 = vector.shape_cast %112 : vector<2x8x32xf32> to vector<16x32xf32>
    %114 = arith.addf %92, %113 : vector<16x32xf32>
    %115 = arith.addf %13, %114 : vector<16x32xf32>
    %116 = vector.broadcast %6 : vector<1x32xf32> to vector<16x32xf32>
    %117 = arith.addf %115, %116 : vector<16x32xf32>
    %cst_44 = arith.constant dense<0.000000e+00> : vector<16xf32>
    %118 = vector.multi_reduction <add>, %117, %cst_44 [1] : vector<16x32xf32> to vector<16xf32>
    %119 = vector.shape_cast %118 : vector<16xf32> to vector<16x1xf32>
    %cst_45 = arith.constant 3.200000e+01 : f32
    %120 = vector.broadcast %cst_45 : f32 to vector<16x1xf32>
    %121 = arith.divf %119, %120 : vector<16x1xf32>
    %122 = vector.broadcast %121 : vector<16x1xf32> to vector<16x32xf32>
    %123 = arith.subf %117, %122 : vector<16x32xf32>
    %124 = arith.mulf %123, %123 : vector<16x32xf32>
    %cst_46 = arith.constant dense<0.000000e+00> : vector<16xf32>
    %125 = vector.multi_reduction <add>, %124, %cst_46 [1] : vector<16x32xf32> to vector<16xf32>
    %126 = vector.shape_cast %125 : vector<16xf32> to vector<16x1xf32>
    %cst_47 = arith.constant 3.200000e+01 : f32
    %127 = vector.broadcast %cst_47 : f32 to vector<16x1xf32>
    %128 = arith.divf %126, %127 : vector<16x1xf32>
    %129 = vector.broadcast %121 : vector<16x1xf32> to vector<16x32xf32>
    %130 = arith.subf %117, %129 : vector<16x32xf32>
    %cst_48 = arith.constant 9.99999974E-6 : f32
    %131 = vector.broadcast %cst_48 : f32 to vector<16x1xf32>
    %132 = arith.addf %128, %131 : vector<16x1xf32>
    %133 = math.rsqrt %132 : vector<16x1xf32>
    %134 = vector.broadcast %133 : vector<16x1xf32> to vector<16x32xf32>
    %135 = arith.mulf %130, %134 : vector<16x32xf32>
    %136 = vector.broadcast %7 : vector<1x32xf32> to vector<16x32xf32>
    %137 = arith.mulf %135, %136 : vector<16x32xf32>
    %138 = vector.broadcast %8 : vector<1x32xf32> to vector<16x32xf32>
    %139 = arith.addf %137, %138 : vector<16x32xf32>
    %c0_49 = arith.constant 0 : index
    %c0_50 = arith.constant 0 : index
    %140 = vector.load %arg5[%c0_49, %c0_50] : memref<32x64xf32, #tpu.memory_space<vmem>>, vector<32x64xf32>
    %cst_51 = arith.constant dense<0.000000e+00> : vector<16x64xf32>
    %141 = tpu.matmul %139, %140, %cst_51 {dimension_numbers = #tpu.dot_dimension_numbers<[1], [0], [0], [1], [0, 0, 1, 1], [], []>} : vector<16x32xf32>, vector<32x64xf32>, vector<16x64xf32> -> vector<16x64xf32>
    %142 = vector.broadcast %9 : vector<1x64xf32> to vector<16x64xf32>
    %143 = arith.addf %141, %142 : vector<16x64xf32>
    %144 = arith.negf %143 : vector<16x64xf32>
    %145 = math.exp %144 : vector<16x64xf32>
    %cst_52 = arith.constant 1.000000e+00 : f32
    %146 = vector.broadcast %cst_52 : f32 to vector<16x64xf32>
    %147 = arith.addf %146, %145 : vector<16x64xf32>
    %148 = arith.divf %146, %147 : vector<16x64xf32>
    %149 = arith.mulf %143, %148 : vector<16x64xf32>
    %c0_53 = arith.constant 0 : index
    %c0_54 = arith.constant 0 : index
    %150 = vector.load %arg6[%c0_53, %c0_54] : memref<64x128xf32, #tpu.memory_space<vmem>>, vector<64x128xf32>
    %cst_55 = arith.constant dense<0.000000e+00> : vector<16x128xf32>
    %151 = tpu.matmul %149, %150, %cst_55 {dimension_numbers = #tpu.dot_dimension_numbers<[1], [0], [0], [1], [0, 0, 1, 1], [], []>} : vector<16x64xf32>, vector<64x128xf32>, vector<16x128xf32> -> vector<16x128xf32>
    %152 = vector.broadcast %10 : vector<1x128xf32> to vector<16x128xf32>
    %153 = arith.addf %151, %152 : vector<16x128xf32>
    %c0_56 = arith.constant 0 : index
    %c0_57 = arith.constant 0 : index
    %154 = vector.load %arg7[%c0_56, %c0_57] : memref<32x128xf32, #tpu.memory_space<vmem>>, vector<32x128xf32>
    %cst_58 = arith.constant dense<0.000000e+00> : vector<16x128xf32>
    %155 = tpu.matmul %117, %154, %cst_58 {dimension_numbers = #tpu.dot_dimension_numbers<[1], [0], [0], [1], [0, 0, 1, 1], [], []>} : vector<16x32xf32>, vector<32x128xf32>, vector<16x128xf32> -> vector<16x128xf32>
    %156 = vector.broadcast %11 : vector<1x128xf32> to vector<16x128xf32>
    %157 = arith.addf %155, %156 : vector<16x128xf32>
    %158 = arith.addf %153, %157 : vector<16x128xf32>
    %c0_59 = arith.constant 0 : index
    %c0_60 = arith.constant 0 : index
    %159 = vector.load %arg9[%c0_59, %c0_60] : memref<16x128xf32, #tpu.memory_space<vmem>>, vector<16x128xf32>
    tpu.vector_store %arg9[%c0_59, %c0_60], %158 {strides = array<i32>} : memref<16x128xf32, #tpu.memory_space<vmem>>, vector<16x128xf32>,
    return
  }
  func.func @transform_0(%arg0: i32) -> (i32, i32, i32) {
    %c0_i32 = arith.constant 0 : i32
    %c0_i32_0 = arith.constant 0 : i32
    %c0_i32_1 = arith.constant 0 : i32
    return %arg0, %c0_i32, %c0_i32_0 : i32, i32, i32
  }
  func.func @transform_1(%arg0: i32) -> (i32, i32, i32) {
    %c0_i32 = arith.constant 0 : i32
    %c0_i32_0 = arith.constant 0 : i32
    %c0_i32_1 = arith.constant 0 : i32
    return %arg0, %c0_i32, %c0_i32_0 : i32, i32, i32
  }
  func.func @transform_2(%arg0: i32) -> (i32, i32) {
    %c0_i32 = arith.constant 0 : i32
    %c0_i32_0 = arith.constant 0 : i32
    %c0_i32_1 = arith.constant 0 : i32
    return %c0_i32, %c0_i32_0 : i32, i32
  }
  func.func @transform_3(%arg0: i32) -> (i32, i32) {
    %c0_i32 = arith.constant 0 : i32
    %c0_i32_0 = arith.constant 0 : i32
    %c0_i32_1 = arith.constant 0 : i32
    return %c0_i32, %c0_i32_0 : i32, i32
  }
  func.func @transform_4(%arg0: i32) -> (i32, i32) {
    %c0_i32 = arith.constant 0 : i32
    %c0_i32_0 = arith.constant 0 : i32
    %c0_i32_1 = arith.constant 0 : i32
    return %c0_i32, %c0_i32_0 : i32, i32
  }
  func.func @transform_5(%arg0: i32) -> (i32, i32) {
    %c0_i32 = arith.constant 0 : i32
    %c0_i32_0 = arith.constant 0 : i32
    %c0_i32_1 = arith.constant 0 : i32
    return %c0_i32, %c0_i32_0 : i32, i32
  }
  func.func @transform_6(%arg0: i32) -> (i32, i32) {
    %c0_i32 = arith.constant 0 : i32
    %c0_i32_0 = arith.constant 0 : i32
    %c0_i32_1 = arith.constant 0 : i32
    return %c0_i32, %c0_i32_0 : i32, i32
  }
  func.func @transform_7(%arg0: i32) -> (i32, i32) {
    %c0_i32 = arith.constant 0 : i32
    %c0_i32_0 = arith.constant 0 : i32
    %c0_i32_1 = arith.constant 0 : i32
    return %c0_i32, %c0_i32_0 : i32, i32
  }
  func.func @transform_8(%arg0: i32) -> (i32, i32) {
    %c0_i32 = arith.constant 0 : i32
    %c0_i32_0 = arith.constant 0 : i32
    return %arg0, %c0_i32 : i32, i32
  }
}

</mosaic_0001>

<bundles_post_ra>
// kernel: tpu_custom_call.1
= control target key start
LH: loop header
LB: loop body
LE: loop exit
PB: predicated region body
PF: predicated region fallthrough
CT: control target
= control target key end

     0   :  { %13 = vsyncpa [#allocation3], 0  ;;  %s1965_s0 = inlined_call_operand.vmem [shape: f32[2,8,32], index: 0, kind: input, shape index: {}]   ;;  %s1966_s1 = inlined_call_operand.hbm [shape: f32[2,8,16], index: 1, kind: input, shape index: {}]   ;;  %s1967_s2 = inlined_call_operand.vmem [shape: f32[32,16], index: 2, kind: input, shape index: {}]   ;;  %s1968_s3 = inlined_call_operand.hbm [shape: f32[16,80], index: 3, kind: input, shape index: {}]   ;;  %s1969_s4 = inlined_call_operand.vmem [shape: f32[32,64], index: 4, kind: input, shape index: {}]   ;;  %s1970_s5 = inlined_call_operand.hbm [shape: f32[64,128], index: 5, kind: input, shape index: {}]   ;;  %s1971_s6 = inlined_call_operand.hbm [shape: f32[32,128], index: 6, kind: input, shape index: {}]   ;;  %s1972_s7 = inlined_call_operand.hbm [shape: f32[12,128], index: 7, kind: input, shape index: {}]   ;;  %s1973_s8 = inlined_call_operand.hbm [shape: f32[16,128], index: 8, kind: output, shape index: {}]  }
   0x1   :  { %14 = vsyncpa [#allocation6], 0 }
   0x2   :  { %15 = vsyncpa [#allocation9], 0 }
   0x3   :  { %16 = vsyncpa [#allocation4], 0  ;;  %s1750_s27 = smov [#allocation5]   ;;  %s1751_s29 = smov [#allocation8]  }
   0x4   :  { %s38_s28 = sshll.u32 %s1750_s27, 4  ;;  %s64_s30 = sshll.u32 %s1751_s29, 4  ;;  %s39_s28 = int_to_ptr.vmem [resolvable:$true] %s38_s28  ;;  %s65_s30 = int_to_ptr.vmem [resolvable:$true] %s64_s30 }
   0x5   :  { %s1630_s9 = scalar_lea.vmem %s39_s28, 256  ;;  %p1635_p1 = scmp.lt.s32.totalorder %s39_s28, %s39_s28 }
   0x6   :  { %p1631_p0 = scmp.ne.s32.totalorder %s39_s28, %s1630_s9  ;;  %p1636_p2 = scmp.lt.s32.totalorder %s1630_s9, %s1630_s9 }
   0x8   :  { %p1637_p3 = por %p1636_p2, %p1635_p1 }
   0xa   :  { %p1638_p4 = pnand %p1637_p3, %p1631_p0 }
   0xc   :  { %1641 = shalt.err (!%p1638_p4)
}
   0xd   :  { %s1752_s10 = smov 128   ;;  %s1753_s11 = smov 8  }
   0xe   :  { %44 = dma.hbm_to_vmem [thread:$0]  %s1968_s3, 256, %s39_s28, [#allocation6], %s1752_s10, %s1752_s10, %s1753_s11  }
   0xf   :  { %s1650_s14 = scalar_lea.vmem %s65_s30, 512  ;;  %p1655_p6 = scmp.lt.s32.totalorder %s65_s30, %s65_s30 }
  0x10   :  { %p1651_p5 = scmp.ne.s32.totalorder %s65_s30, %s1650_s14  ;;  %p1656_p7 = scmp.lt.s32.totalorder %s1650_s14, %s1650_s14 }
  0x12   :  { %p1657_p8 = por %p1656_p7, %p1655_p6 }
  0x14   :  { %p1658_p9 = pnand %p1657_p8, %p1651_p5 }
  0x16   :  { %1661 = shalt.err (!%p1658_p9)
}
  0x17   :  { %70 = dma.hbm_to_vmem [thread:$0]  %s1971_s6, 512, %s65_s30, [#allocation9], %s1752_s10, %s1752_s10, %s1753_s11  }
  0x18   :  { %s1754_s17 = smov [#allocation2]   ;;  %s1755_s19 = smov [#allocation7]  }
  0x19   :  { %s24_s18 = sshll.u32 %s1754_s17, 4  ;;  %s52_s20 = sshll.u32 %s1755_s19, 4  ;;  %s25_s18 = int_to_ptr.vmem [resolvable:$true] %s24_s18  ;;  %s53_s20 = int_to_ptr.vmem [resolvable:$true] %s52_s20 }
  0x1a   :  { %s1670_s3 = scalar_lea.vmem %s25_s18, 256  ;;  %p1675_p11 = scmp.lt.s32.totalorder %s25_s18, %s25_s18 }
  0x1b   :  { %p1671_p10 = scmp.ne.s32.totalorder %s25_s18, %s1670_s3  ;;  %p1676_p12 = scmp.lt.s32.totalorder %s1670_s3, %s1670_s3 }
  0x1d   :  { %p1677_p13 = por %p1676_p12, %p1675_p11 }
  0x1f   :  { %p1678_p0 = pnand %p1677_p13, %p1671_p10 }
  0x21   :  { %1681 = shalt.err (!%p1678_p0)
}
  0x22   :  { %30 = dma.hbm_to_vmem [thread:$0]  %s1966_s1, 256, %s25_s18, [#allocation3], %s1752_s10, %s1752_s10, %s1753_s11  }
  0x23   :  { %s1690_s6 = scalar_lea.vmem %s53_s20, 1024  ;;  %p1695_p2 = scmp.lt.s32.totalorder %s53_s20, %s53_s20 }
  0x24   :  { %p1691_p1 = scmp.ne.s32.totalorder %s53_s20, %s1690_s6  ;;  %p1696_p3 = scmp.lt.s32.totalorder %s1690_s6, %s1690_s6 }
  0x26   :  { %p1697_p4 = por %p1696_p3, %p1695_p2 }
  0x28   :  { %p1698_p5 = pnand %p1697_p4, %p1691_p1 }
  0x2a   :  { %1701 = shalt.err (!%p1698_p5)
}
  0x2b   :  { %58 = dma.hbm_to_vmem [thread:$0]  %s1970_s5, 1024, %s53_s20, [#allocation6], %s1752_s10, %s1752_s10, %s1753_s11  }
  0x2c   :  { %s1756_s25 = smov [#allocation10]  }
  0x2d   :  { %s76_s26 = sshll.u32 %s1756_s25, 4  ;;  %s77_s26 = int_to_ptr.vmem [resolvable:$true] %s76_s26 }
  0x2e   :  { %s1710_s27 = scalar_lea.vmem %s77_s26, 256  ;;  %p1715_p7 = scmp.lt.s32.totalorder %s77_s26, %s77_s26 }
  0x2f   :  { %p1711_p6 = scmp.ne.s32.totalorder %s77_s26, %s1710_s27  ;;  %p1716_p8 = scmp.lt.s32.totalorder %s1710_s27, %s1710_s27 }
  0x31   :  { %p1717_p9 = por %p1716_p8, %p1715_p7 }
  0x33   :  { %p1718_p10 = pnand %p1717_p9, %p1711_p6 }
  0x35   :  { %1721 = shalt.err (!%p1718_p10)
}
  0x36   :  { %82 = dma.hbm_to_vmem [thread:$0]  %s1972_s7, 256, %s77_s26, [#allocation9], %s1752_s10, %s1752_s10, %s1753_s11  }
  0x37   :  { %1742 = dma.done.wait [#allocation3], 256  }
  0x38   :  { %1743 = vsyncadd [#allocation3], 4294967040 }
  0x39   :  { %1744 = dma.done.wait [#allocation6], 1280  }
  0x3a   :  { %1745 = vsyncadd [#allocation6], 4294966016 }
  0x3b   :  { %1746 = dma.done.wait [#allocation9], 768  }
  0x3c   :  { %1747 = vsyncadd [#allocation9], 4294966528  ;;  %vm243_vm0 = vcmask 130048   ;;  %vm114_vm1 = vcmask 261120   ;;  %v112_v0 = vld [vmem:[#allocation2] sm:$0xff]  ;;  %v113_v1 = vld [vmem:[#allocation2 + $0x8] sm:$0xff] }
  0x3d   :  { %v1841_v2 = vld [vmem:[%s1965_s0] sm:$0xff]  ;;  %v244_v3 = vsel %vm243_vm0, %v112_v0, 0.0  ;;  %v1849_v5 = vld [vmem:[%s1965_s0 + $0x8] sm:$0xff]  ;;  %v247_v6 = vsel %vm243_vm0, %v113_v1, 0.0  ;;  %v157_v28 = vld [vmem:[%s1967_s2 + $0x18] sm:$0xff]  ;;  %vm1758_vm2 = vmmov 0  }
  0x3e   :  { %v115_v4 = vsel %vm114_vm1, %v1841_v2, 0.0  ;;  %245 = vadd.xlane.f32.xlu0 %v244_v3  ;;  %v118_v7 = vsel %vm114_vm1, %v1849_v5, 0.0  ;;  %v284_v29 = vld [vmem:[#allocation5 + $0x8] sm:$0xff]  ;;  %1474 = vmatprep.subr.mxu0 %v157_v28  ;;  %v156_v30 = vld [vmem:[%s1967_s2 + $0x10] sm:$0xff]  ;;  %v155_v32 = vld [vmem:[%s1967_s2 + $0x8] sm:$0xff]  ;;  %v1757_v3 = vmov 0.0  }
  0x3f   :  { %116 = vadd.xlane.f32.xlu1 %v115_v4  ;;  %1485 = vmatprep.subr.mxu1 %v284_v29  ;;  %v283_v31 = vld [vmem:[#allocation5] sm:$0xff]  ;;  %v154_v33 = vld [vmem:[%s1967_s2] sm:$0xff]  ;;  %vm370_vm3 = vcmask 64512   ;;  %s1759_s2 = smov 112   ;;  %s1760_s18 = smov 120   ;;  %vm1196_vm4 = vcmask 523264  }
  0x40   :  { %1475 = vmatpush3.msra.mxu0 %v157_v28  ;;  %1486 = vmatpush3.msra.mxu1 %v284_v29  ;;  %v1395_v47 = vld [vmem:[#allocation10 + $0x3] ss:$0 sm:$0xff]  ;;  %v1396_v49 = vld [vmem:[#allocation10 + $0x4] ss:$0 sm:$0xff]  ;;  %v1390_v52 = vld [vmem:[#allocation10] ss:$0 sm:$0xff] }
  0x41   :  { %1476 = vmatprep.subr.mxu0 %v156_v30  ;;  %1487 = vmatprep.subr.mxu1 %v283_v31  ;;  %v1391_v57 = vld [vmem:[#allocation10 + $0x1] ss:$0 sm:$0xff]  ;;  %v1397_v4 = vld [vmem:[#allocation10 + $0x5] ss:$0 sm:$0xff]  ;;  %s1761_s19 = smov 80  }
  0x42   :  { %248 = vadd.xlane.f32.xlu0 %v247_v6  ;;  %1477 = vmatpush3.msra.mxu0 %v156_v30 }
  0x43   :  { %119 = vadd.xlane.f32.xlu1 %v118_v7  ;;  %1488 = vmatpush3.msra.mxu1 %v283_v31 }
  0x44   :  { %1478 = vmatprep.subr.mxu0 %v155_v32  ;;  %1492 = vmatprep.subr.mxu1 %v1757_v3 }
  0x45   :  { %1479 = vmatpush3.msra.mxu0 %v155_v32 }
  0x46   :  { %1480 = vmatprep.subr.mxu0 %v154_v33 }
  0x47   :  { %1481 = vmatpush3.msra.mxu0 %v154_v33 }
  0x48   :  { %1497 = vmatprep.subr.mxu0 %v1757_v3 }
  0xc7   :  { %v246_v8 = vpop.xlane.xlu0 %245 }
  0xc8   :  { %v117_v9 = vpop.xlane.xlu1 %116  ;;  %v251_v10 = vmul.f32 0.0625, %v246_v8  ;;  %v1392_v8 = vld [vmem:[#allocation10 + $0x2] ss:$0 sm:$0xff] }
  0xc9   :  { %v122_v11 = vmul.f32 0.03125, %v117_v9 }
  0xca   :  { %v253_v12 = vsub.f32 %v112_v0, %v251_v10 }
  0xcb   :  { %v124_v13 = vsub.f32 %v1841_v2, %v122_v11  ;;  %v249_v14 = vpop.xlane.xlu0 %248 }
  0xcc   :  { %v120_v15 = vpop.xlane.xlu1 %119  ;;  %v252_v16 = vmul.f32 0.0625, %v249_v14  ;;  %v255_v17 = vmul.f32 %v253_v12, %v253_v12 }
  0xcd   :  { %v123_v18 = vmul.f32 0.03125, %v120_v15  ;;  %v126_v19 = vmul.f32 %v124_v13, %v124_v13 }
  0xce   :  { %v254_v20 = vsub.f32 %v113_v1, %v252_v16  ;;  %v257_v21 = vsel %vm243_vm0, %v255_v17, 0.0 }
  0xcf   :  { %v125_v22 = vsub.f32 %v1849_v5, %v123_v18  ;;  %258 = vadd.xlane.f32.xlu0 %v257_v21  ;;  %v128_v24 = vsel %vm114_vm1, %v126_v19, 0.0 }
  0xd0   :  { %v256_v23 = vmul.f32 %v254_v20, %v254_v20 }
  0xd1   :  { %v127_v25 = vmul.f32 %v125_v22, %v125_v22 }
  0xd2   :  { %v260_v26 = vsel %vm243_vm0, %v256_v23, 0.0 }
  0xd3   :  { %261 = vadd.xlane.f32.xlu1 %v260_v26  ;;  %129 = vadd.xlane.f32.xlu0 %v128_v24  ;;  %v131_v27 = vsel %vm114_vm1, %v127_v25, 0.0 }
  0xd7   :  { %132 = vadd.xlane.f32.xlu1 %v131_v27 }
 0x158   :  { %v259_v34 = vpop.xlane.xlu0 %258 }
 0x159   :  { %v263_v35 = vmul.f32 0.0625, %v259_v34 }
 0x15b   :  { %v265_v36 = vadd.f32 1e-05, %v263_v35 }
 0x15c   :  { %v130_v37 = vpop.xlane.xlu0 %129  ;;  %v262_v38 = vpop.xlane.xlu1 %261 }
 0x15d   :  { %1586 = vrsqrt.f32 %v265_v36  ;;  %v134_v39 = vmul.f32 0.03125, %v130_v37  ;;  %v264_v40 = vmul.f32 0.0625, %v262_v38 }
 0x15f   :  { %v136_v41 = vadd.f32 1e-05, %v134_v39  ;;  %v266_v42 = vadd.f32 1e-05, %v264_v40 }
 0x160   :  { %v133_v43 = vpop.xlane.xlu1 %132 }
 0x161   :  { %1588 = vrsqrt.f32 %v136_v41  ;;  %v135_v44 = vmul.f32 0.03125, %v133_v43 }
 0x162   :  { %1590 = vrsqrt.f32 %v266_v42 }
 0x163   :  { %v137_v45 = vadd.f32 1e-05, %v135_v44 }
 0x165   :  { %1592 = vrsqrt.f32 %v137_v45 }
 0x16a   :  { %v1587_v46 = vpop.eup %1586 }
 0x16b   :  { %v269_v48 = vmul.f32 %v1587_v46, %v253_v12 }
 0x16d   :  { %v275_v50 = vmul.f32 %v1395_v47, %v269_v48 }
 0x16e   :  { %v1589_v51 = vpop.eup %1588 }
 0x16f   :  { %v1591_v53 = vpop.eup %1590  ;;  %v281_v54 = vadd.f32 %v1396_v49, %v275_v50  ;;  %v140_v55 = vmul.f32 %v1589_v51, %v124_v13 }
 0x170   :  { %v270_v56 = vmul.f32 %v1591_v53, %v254_v20 }
 0x171   :  { %1489 = vmatprep.mubr.msk.f32.mxu1 %vm243_vm0, %v281_v54  ;;  %v146_v58 = vmul.f32 %v1390_v52, %v140_v55 }
 0x172   :  { %v1593_v59 = vpop.eup %1592  ;;  %v276_v60 = vmul.f32 %v1395_v47, %v270_v56 }
 0x173   :  { %v141_v61 = vmul.f32 %v1593_v59, %v125_v22  ;;  %v152_v62 = vadd.f32 %v1391_v57, %v146_v58 }
 0x174   :  { %v282_v63 = vadd.f32 %v1396_v49, %v276_v60 }
 0x175   :  { %v147_v0 = vmul.f32 %v1390_v52, %v141_v61  ;;  %1482 = vmatprep.mubr.msk.f32.mxu0 %vm114_vm1, %v152_v62 }
 0x176   :  { %1490 = vmatmul.mubr.msk.f32.vlgmr.msra.gmra.mxu1 %vm243_vm0, %v282_v63 }
 0x177   :  { %v153_v1 = vadd.f32 %v1391_v57, %v147_v0  ;;  %1494 = vmatprep.mubr.msk.f32.mxu1 %vm1758_vm2, %v1757_v3 }
 0x179   :  { %1483 = vmatmul.mubr.msk.f32.vlgmr.msra.gmra.mxu0 %vm114_vm1, %v153_v1 }
 0x17a   :  { %1499 = vmatprep.mubr.msk.f32.mxu0 %vm1758_vm2, %v1757_v3 }
 0x236   :  { %v1491_v6 = vpop.f32.mrf.mxu1 }
 0x237   :  { %v1882_v7 = vadd.f32 %v1491_v6, %v1397_v4 }
 0x238   :  { %v361_v9 = vpop.f32.mrf.mxu1 }
 0x239   :  { %v1884_v10 = vadd.f32 %v1397_v4, %v361_v9  ;;  %1498 = vmatpush3.xpose.msk.msra.mxu0 %vm370_vm3, %v1882_v7  ;;  %v1484_v11 = vpop.f32.mrf.mxu0 }
 0x23a   :  { %v240_v12 = vadd.f32 %v1484_v11, %v1392_v8  ;;  %1507 = vmatprep.subr.mxu0 %v1757_v3 }
 0x23b   :  { %1493 = vmatpush3.xpose.msk.msra.mxu1 %vm370_vm3, %v1884_v10  ;;  %v234_v13 = vpop.f32.mrf.mxu0 }
 0x23c   :  { %v235_v14 = vadd.f32 %v1392_v8, %v234_v13  ;;  %1500 = vmatmul.mubr.msk.f32.vlgmr.msra.gmra.mxu0 %vm370_vm3, %v240_v12  ;;  %1502 = vmatprep.subr.mxu1 %v1757_v3 }
 0x23d   :  { %1509 = vmatprep.mubr.msk.f32.mxu0 %vm1758_vm2, %v1757_v3 }
 0x23e   :  { %1495 = vmatmul.mubr.msk.f32.vlgmr.msra.gmra.mxu1 %vm370_vm3, %v235_v14 }
 0x23f   :  { %1504 = vmatprep.mubr.msk.f32.mxu1 %vm1758_vm2, %v1757_v3 }
 0x2fc   :  { %v519_v15 = vpop.f32.mrf.mxu0 }
 0x2fd   :  { %v524_v16 = vmul.f32 0.35355338, %v519_v15 }
 0x2fe   :  { %v443_v17 = vpop.f32.mrf.mxu1  ;;  %v1501_v18 = vpop.f32.mrf.mxu0 }
 0x2ff   :  { %v523_v19 = vmul.f32 0.35355338, %v443_v17  ;;  %v528_v20 = vsel %vm370_vm3, %v524_v16, -inf }
 0x300   :  { %529 = vmax.xlane.f32.xlu1 %v528_v20  ;;  %v1496_v21 = vpop.f32.mrf.mxu1 }
 0x301   :  { %v525_v22 = vsel %vm370_vm3, %v523_v19, -inf }
 0x302   :  { %526 = vmax.xlane.f32.xlu0 %v525_v22 }
 0x389   :  { %v530_v23 = vpop.xlane.xlu1 %529 }
 0x38a   :  { %v532_v24 = vsub.f32 %v524_v16, %v530_v23  ;;  %v1412_v16 = vld [vmem:[#allocation10 + $0x6] ss:$0 sm:$0xff] }
 0x38b   :  { %v527_v25 = vpop.xlane.xlu0 %526 }
 0x38c   :  { %v535_v26 = vmul.f32 1.442695, %v532_v24  ;;  %v531_v27 = vsub.f32 %v523_v19, %v527_v25 }
 0x38e   :  { %1594 = vpow2.f32 %v535_v26  ;;  %v533_v28 = vmul.f32 1.442695, %v531_v27 }
 0x390   :  { %1596 = vpow2.f32 %v533_v28 }
 0x39b   :  { %v1595_v29 = vpop.eup %1594 }
 0x39c   :  { %v540_v30 = vsel %vm370_vm3, %v1595_v29, 0.0 }
 0x39d   :  { %v1597_v31 = vpop.eup %1596  ;;  %541 = vadd.xlane.f32.xlu1 %v540_v30 }
 0x39e   :  { %v537_v32 = vsel %vm370_vm3, %v1597_v31, 0.0 }
 0x39f   :  { %538 = vadd.xlane.f32.xlu0 %v537_v32 }
 0x3ae   :  { %623 = vrot.lane.b32.xlu1 %v1882_v7, %s1759_s2 }
 0x3b2   :  { %703 = vrot.lane.b32.xlu1 %v1884_v10, %s1760_s18 }
 0x3b5   :  { %547 = vrot.lane.b32.xlu0 %v1884_v10, %s1759_s2 }
 0x3b6   :  { %781 = vrot.lane.b32.xlu1 %v1882_v7, %s1760_s18 }
 0x3b9   :  { %701 = vrot.lane.b32.xlu0 %v235_v14, %s1760_s18 }
 0x3ba   :  { %779 = vrot.lane.b32.xlu1 %v240_v12, %s1760_s18 }
 0x426   :  { %v542_v33 = vpop.xlane.xlu1 %541 }
 0x427   :  { %1598 = vrcp.f32 %v542_v33 }
 0x428   :  { %v539_v34 = vpop.xlane.xlu0 %538 }
 0x429   :  { %1600 = vrcp.f32 %v539_v34  ;;  %v1084_v34 = vld [vmem:[%s1969_s4 + $0x18] sm:$0xff] }
 0x42a   :  { %v624_v35 = vpop.permute.xlu1 %623 }
 0x42b   :  { %1508 = vmatpush3.msra.mxu0 %v624_v35  ;;  %v1083_v35 = vld [vmem:[%s1969_s4 + $0x10] sm:$0xff] }
 0x42c   :  { %v548_v36 = vpop.permute.xlu0 %547  ;;  %1517 = vmatprep.subr.mxu0 %v1757_v3 }
 0x42d   :  { %1503 = vmatpush3.msra.mxu1 %v548_v36  ;;  %v1082_v36 = vld [vmem:[%s1969_s4 + $0x8] sm:$0xff] }
 0x42e   :  { %v704_v37 = vpop.permute.xlu1 %703  ;;  %1512 = vmatprep.subr.mxu1 %v1757_v3 }
 0x430   :  { %v702_v44 = vpop.permute.xlu0 %701 }
 0x432   :  { %v782_v39 = vpop.permute.xlu1 %781 }
 0x434   :  { %v1599_v38 = vpop.eup %1598 }
 0x435   :  { %v546_v40 = vmul.f32 %v1599_v38, %v1595_v29  ;;  %v1281_v38 = vld [vmem:[#allocation8 + $0x18] sm:$0xff] }
 0x436   :  { %v1601_v41 = vpop.eup %1600  ;;  %v780_v43 = vpop.permute.xlu1 %779 }
 0x437   :  { %1510 = vmatmul.mubr.msk.f32.vlgmr.msra.gmra.mxu0 %vm370_vm3, %v546_v40  ;;  %v545_v42 = vmul.f32 %v1601_v41, %v1597_v31 }
 0x438   :  { %1518 = vmatpush3.xpose.msk.msra.mxu0 %vm370_vm3, %v782_v39  ;;  %1519 = vmatprep.mubr.msk.f32.mxu0 %vm1758_vm2, %v1757_v3 }
 0x439   :  { %1505 = vmatmul.mubr.msk.f32.vlgmr.msra.gmra.mxu1 %vm370_vm3, %v545_v42  ;;  %1527 = vmatprep.subr.mxu0 %v1757_v3 }
 0x43a   :  { %1513 = vmatpush3.xpose.msk.msra.mxu1 %vm370_vm3, %v704_v37  ;;  %1514 = vmatprep.mubr.msk.f32.mxu1 %vm1758_vm2, %v1757_v3  ;;  %v1081_v37 = vld [vmem:[%s1969_s4] sm:$0xff]  ;;  %s1762_s4 = smov [#allocation11]  }
 0x43b   :  { %1520 = vmatmul.mubr.msk.f32.vlgmr.msra.gmra.mxu0 %vm370_vm3, %v780_v43  ;;  %1522 = vmatprep.subr.mxu1 %v1757_v3  ;;  %s1376_s26 = sshll.u32 %s1762_s4, 4  ;;  %s1377_s26 = int_to_ptr.vmem [resolvable:$true] %s1376_s26 }
 0x43c   :  { %1529 = vmatprep.mubr.msk.f32.mxu0 %vm1758_vm2, %v1757_v3  ;;  %s1722_s27 = scalar_lea.vmem %s1377_s26, 256  ;;  %p1727_p12 = scmp.lt.s32.totalorder %s1377_s26, %s1377_s26 }
 0x43d   :  { %1515 = vmatmul.mubr.msk.f32.vlgmr.msra.gmra.mxu1 %vm370_vm3, %v702_v44  ;;  %p1723_p11 = scmp.ne.s32.totalorder %s1377_s26, %s1722_s27  ;;  %p1728_p13 = scmp.lt.s32.totalorder %s1722_s27, %s1722_s27 }
 0x43e   :  { %1524 = vmatprep.mubr.msk.f32.mxu1 %vm1758_vm2, %v1757_v3 }
 0x43f   :  { %p1729_p0 = por %p1728_p13, %p1727_p12 }
 0x441   :  { %p1730_p1 = pnand %p1729_p0, %p1723_p11 }
 0x4f7   :  { %v695_v45 = vpop.f32.mrf.mxu0 }
 0x4f9   :  { %v619_v46 = vpop.f32.mrf.mxu1  ;;  %v1511_v47 = vpop.f32.mrf.mxu0 }
 0x4fa   :  { %v1413_v47 = vld [vmem:[#allocation10 + $0x7] ss:$0 sm:$0xff] }
 0x4fb   :  { %v1506_v48 = vpop.f32.mrf.mxu1  ;;  %v853_v49 = vpop.f32.mrf.mxu0 }
 0x4fc   :  { %v858_v50 = vmul.f32 0.35355338, %v853_v49 }
 0x4fd   :  { %v775_v51 = vpop.f32.mrf.mxu1  ;;  %v1521_v52 = vpop.f32.mrf.mxu0 }
 0x4fe   :  { %v857_v53 = vmul.f32 0.35355338, %v775_v51  ;;  %v862_v54 = vsel %vm370_vm3, %v858_v50, -inf  ;;  %v1414_v51 = vld [vmem:[#allocation10 + $0x8] ss:$0 sm:$0xff] }
 0x4ff   :  { %863 = vmax.xlane.f32.xlu1 %v862_v54  ;;  %v1516_v55 = vpop.f32.mrf.mxu1 }
 0x500   :  { %v859_v56 = vsel %vm370_vm3, %v857_v53, -inf  ;;  %v1280_v55 = vld [vmem:[#allocation8 + $0x10] sm:$0xff] }
 0x501   :  { %860 = vmax.xlane.f32.xlu0 %v859_v56  ;;  %v1279_v56 = vld [vmem:[#allocation8 + $0x8] sm:$0xff] }
 0x510   :  { %957 = vrot.lane.b32.xlu1 %v1882_v7, %s1761_s19 }
 0x588   :  { %v864_v57 = vpop.xlane.xlu1 %863 }
 0x589   :  { %v866_v58 = vsub.f32 %v858_v50, %v864_v57  ;;  %v1278_v57 = vld [vmem:[#allocation8] sm:$0xff] }
 0x58a   :  { %v861_v59 = vpop.xlane.xlu0 %860 }
 0x58b   :  { %v869_v60 = vmul.f32 1.442695, %v866_v58  ;;  %v865_v61 = vsub.f32 %v857_v53, %v861_v59  ;;  %v1191_v58 = vld [vmem:[#allocation7 + $0x38] sm:$0xff]  ;;  %v1190_v59 = vld [vmem:[#allocation7 + $0x30] sm:$0xff] }
 0x58c   :  { %v958_v62 = vpop.permute.xlu1 %957 }
 0x58d   :  { %1602 = vpow2.f32 %v869_v60  ;;  %v867_v63 = vmul.f32 1.442695, %v865_v61  ;;  %1528 = vmatpush3.msra.mxu0 %v958_v62  ;;  %v1189_v60 = vld [vmem:[#allocation7 + $0x28] sm:$0xff]  ;;  %v1188_v61 = vld [vmem:[#allocation7 + $0x20] sm:$0xff]  ;;  %v1187_v62 = vld [vmem:[#allocation7 + $0x18] sm:$0xff] }
 0x58e   :  { %1543 = vmatprep.subr.mxu0 %v1191_v58 }
 0x58f   :  { %1604 = vpow2.f32 %v867_v63  ;;  %v1186_v63 = vld [vmem:[#allocation7 + $0x10] sm:$0xff] }
 0x59a   :  { %v1603_v0 = vpop.eup %1602 }
 0x59b   :  { %v874_v1 = vsel %vm370_vm3, %v1603_v0, 0.0 }
 0x59c   :  { %v1605_v3 = vpop.eup %1604  ;;  %875 = vadd.xlane.f32.xlu0 %v874_v1  ;;  %v1184_v1 = vld [vmem:[#allocation7] sm:$0xff] }
 0x59d   :  { %v871_v4 = vsel %vm370_vm3, %v1605_v3, 0.0 }
 0x5a0   :  { %872 = vadd.xlane.f32.xlu0 %v871_v4 }
 0x5b6   :  { %881 = vrot.lane.b32.xlu0 %v1884_v10, %s1761_s19 }
 0x625   :  { %v876_v6 = vpop.xlane.xlu0 %875 }
 0x626   :  { %1606 = vrcp.f32 %v876_v6 }
 0x629   :  { %v873_v7 = vpop.xlane.xlu0 %872 }
 0x62a   :  { %1608 = vrcp.f32 %v873_v7 }
 0x62d   :  { %v882_v8 = vpop.permute.xlu0 %881 }
 0x62e   :  { %1523 = vmatpush3.msra.mxu1 %v882_v8 }
 0x62f   :  { %1532 = vmatprep.subr.mxu1 %v1084_v34 }
 0x633   :  { %v1607_v9 = vpop.eup %1606 }
 0x634   :  { %v880_v11 = vmul.f32 %v1607_v9, %v1603_v0  ;;  %v1185_v0 = vld [vmem:[#allocation7 + $0x8] sm:$0xff] }
 0x636   :  { %1530 = vmatmul.mubr.msk.f32.vlgmr.msra.gmra.mxu0 %vm370_vm3, %v880_v11 }
 0x637   :  { %v1609_v12 = vpop.eup %1608  ;;  %1544 = vmatpush3.msra.mxu0 %v1191_v58 }
 0x638   :  { %v879_v13 = vmul.f32 %v1609_v12, %v1605_v3  ;;  %1545 = vmatprep.subr.mxu0 %v1190_v59  ;;  %v1415_v3 = vld [vmem:[#allocation10 + $0x9] ss:$0 sm:$0xff] }
 0x639   :  { %1546 = vmatpush3.msra.mxu0 %v1190_v59 }
 0x63a   :  { %1525 = vmatmul.mubr.msk.f32.vlgmr.msra.gmra.mxu1 %vm370_vm3, %v879_v13  ;;  %1547 = vmatprep.subr.mxu0 %v1189_v60 }
 0x63b   :  { %1533 = vmatpush3.msra.mxu1 %v1084_v34  ;;  %1548 = vmatpush3.msra.mxu0 %v1189_v60 }
 0x63c   :  { %1534 = vmatprep.subr.mxu1 %v1083_v35  ;;  %1549 = vmatprep.subr.mxu0 %v1188_v61 }
 0x63d   :  { %1535 = vmatpush3.msra.mxu1 %v1083_v35  ;;  %1550 = vmatpush3.msra.mxu0 %v1188_v61 }
 0x63e   :  { %1536 = vmatprep.subr.mxu1 %v1082_v36  ;;  %1551 = vmatprep.subr.mxu0 %v1187_v62 }
 0x63f   :  { %1537 = vmatpush3.msra.mxu1 %v1082_v36  ;;  %1552 = vmatpush3.msra.mxu0 %v1187_v62 }
 0x640   :  { %1538 = vmatprep.subr.mxu1 %v1081_v37  ;;  %1553 = vmatprep.subr.mxu0 %v1186_v63 }
 0x641   :  { %1539 = vmatpush3.msra.mxu1 %v1081_v37  ;;  %1554 = vmatpush3.msra.mxu0 %v1186_v63 }
 0x642   :  { %1562 = vmatprep.subr.mxu1 %v1281_v38  ;;  %1555 = vmatprep.subr.mxu0 %v1185_v0 }
 0x643   :  { %1556 = vmatpush3.msra.mxu0 %v1185_v0 }
 0x644   :  { %1557 = vmatprep.subr.mxu0 %v1184_v1 }
 0x645   :  { %1558 = vmatpush3.msra.mxu0 %v1184_v1 }
 0x6f6   :  { %v1029_v14 = vpop.f32.mrf.mxu0 }
 0x6f7   :  { %v1034_v15 = vadd.f32 %v1029_v14, %v695_v45 }
 0x6f8   :  { %v1531_v17 = vpop.f32.mrf.mxu0 }
 0x6f9   :  { %v1036_v10 = vadd.f32 %v1034_v15, %v1849_v5 }
 0x6fa   :  { %v953_v18 = vpop.f32.mrf.mxu1 }
 0x6fb   :  { %v1933_v19 = vadd.f32 %v1412_v16, %v1036_v10  ;;  %v1033_v20 = vadd.f32 %v953_v18, %v619_v46 }
 0x6fc   :  { %v1526_v21 = vpop.f32.mrf.mxu1 }
 0x6fd   :  { %v1035_v22 = vadd.f32 %v1033_v20, %v1841_v2  ;;  %v1046_v23 = vsel %vm114_vm1, %v1933_v19, 0.0  ;;  %v1423_v20 = vld [vmem:[#allocation10 + $0xb] ss:$0 sm:$0xff]  ;;  %v1420_v21 = vld [vmem:[#allocation10 + $0xa] ss:$0 sm:$0xff] }
 0x6fe   :  { %1047 = vadd.xlane.f32.xlu0 %v1046_v23 }
 0x6ff   :  { %v1041_v24 = vadd.f32 %v1412_v16, %v1035_v22 }
 0x701   :  { %v1043_v25 = vsel %vm114_vm1, %v1041_v24, 0.0 }
 0x702   :  { %1044 = vadd.xlane.f32.xlu1 %v1043_v25 }
 0x787   :  { %v1048_v26 = vpop.xlane.xlu0 %1047 }
 0x788   :  { %v1050_v27 = vmul.f32 0.03125, %v1048_v26 }
 0x78a   :  { %v1052_v28 = vsub.f32 %v1933_v19, %v1050_v27 }
 0x78b   :  { %v1045_v5 = vpop.xlane.xlu1 %1044 }
 0x78c   :  { %v1049_v29 = vmul.f32 0.03125, %v1045_v5  ;;  %v1054_v30 = vmul.f32 %v1052_v28, %v1052_v28 }
 0x78e   :  { %v1051_v31 = vsub.f32 %v1041_v24, %v1049_v29  ;;  %v1058_v32 = vsel %vm114_vm1, %v1054_v30, 0.0 }
 0x78f   :  { %1059 = vadd.xlane.f32.xlu1 %v1058_v32 }
 0x790   :  { %v1053_v2 = vmul.f32 %v1051_v31, %v1051_v31 }
 0x792   :  { %v1055_v33 = vsel %vm114_vm1, %v1053_v2, 0.0 }
 0x793   :  { %1056 = vadd.xlane.f32.xlu0 %v1055_v33 }
 0x818   :  { %v1060_v39 = vpop.xlane.xlu1 %1059 }
 0x819   :  { %v1062_v40 = vmul.f32 0.03125, %v1060_v39 }
 0x81b   :  { %v1064_v41 = vadd.f32 1e-05, %v1062_v40 }
 0x81c   :  { %v1057_v42 = vpop.xlane.xlu0 %1056 }
 0x81d   :  { %1610 = vrsqrt.f32 %v1064_v41  ;;  %v1061_v43 = vmul.f32 0.03125, %v1057_v42 }
 0x81f   :  { %v1063_v44 = vadd.f32 1e-05, %v1061_v43 }
 0x821   :  { %1612 = vrsqrt.f32 %v1063_v44 }
 0x82a   :  { %v1611_v45 = vpop.eup %1610 }
 0x82b   :  { %v1068_v46 = vmul.f32 %v1611_v45, %v1052_v28 }
 0x82d   :  { %v1074_v50 = vmul.f32 %v1413_v47, %v1068_v46 }
 0x82e   :  { %v1613_v48 = vpop.eup %1612 }
 0x82f   :  { %v1067_v49 = vmul.f32 %v1613_v48, %v1051_v31  ;;  %v1080_v54 = vadd.f32 %v1414_v51, %v1074_v50 }
 0x831   :  { %v1073_v52 = vmul.f32 %v1413_v47, %v1067_v49 }
 0x833   :  { %v1079_v53 = vadd.f32 %v1414_v51, %v1073_v52 }
 0x835   :  { %1540 = vmatprep.mubr.msk.f32.mxu1 %vm114_vm1, %v1079_v53 }
 0x836   :  { %1541 = vmatmul.mubr.msk.f32.vlgmr.msra.gmra.mxu1 %vm114_vm1, %v1080_v54 }
 0x837   :  { %1563 = vmatpush3.msra.mxu1 %v1281_v38  ;;  %1570 = vmatprep.mubr.msk.f32.mxu1 %vm114_vm1, %v1041_v24 }
 0x838   :  { %1564 = vmatprep.subr.mxu1 %v1280_v55 }
 0x839   :  { %1565 = vmatpush3.msra.mxu1 %v1280_v55 }
 0x83a   :  { %1566 = vmatprep.subr.mxu1 %v1279_v56 }
 0x83b   :  { %1567 = vmatpush3.msra.mxu1 %v1279_v56 }
 0x83c   :  { %1568 = vmatprep.subr.mxu1 %v1278_v57 }
 0x83d   :  { %1569 = vmatpush3.msra.mxu1 %v1278_v57 }
 0x83e   :  { %1571 = vmatmul.mubr.msk.f32.vlgmr.msra.gmra.mxu1 %vm114_vm1, %v1933_v19 }
 0x8f6   :  { %v1542_v4 = vpop.f32.mrf.mxu1 }
 0x8f7   :  { %v1167_v6 = vadd.f32 %v1542_v4, %v1415_v3 }
 0x8f8   :  { %v1161_v7 = vpop.f32.mrf.mxu1 }
 0x8f9   :  { %v1419_v8 = vmul.f32 -1.442695, %v1167_v6  ;;  %v1162_v9 = vadd.f32 %v1415_v3, %v1161_v7 }
 0x8fb   :  { %1614 = vpow2.f32 %v1419_v8  ;;  %v1418_v11 = vmul.f32 -1.442695, %v1162_v9 }
 0x8fd   :  { %1616 = vpow2.f32 %v1418_v11 }
 0x8fe   :  { %v1572_v19 = vpop.f32.mrf.mxu1 }
 0x8ff   :  { %v1364_v24 = vadd.f32 %v1572_v19, %v1423_v20 }
 0x900   :  { %v1358_v22 = vpop.f32.mrf.mxu1 }
 0x901   :  { %v1359_v27 = vadd.f32 %v1423_v20, %v1358_v22 }
 0x908   :  { %v1615_v12 = vpop.eup %1614 }
 0x909   :  { %v1177_v13 = vadd.f32 1.0, %v1615_v12 }
 0x90a   :  { %v1617_v14 = vpop.eup %1616 }
 0x90b   :  { %v1176_v15 = vadd.f32 1.0, %v1617_v14  ;;  %1618 = vrcp.f32 %v1177_v13 }
 0x90d   :  { %1620 = vrcp.f32 %v1176_v15 }
 0x918   :  { %v1619_v16 = vpop.eup %1618 }
 0x919   :  { %v1183_v18 = vmul.f32 %v1619_v16, %v1167_v6 }
 0x91a   :  { %v1621_v17 = vpop.eup %1620 }
 0x91b   :  { %v1182_v10 = vmul.f32 %v1621_v17, %v1162_v9 }
 0x91d   :  { %1559 = vmatprep.mubr.msk.f32.mxu0 %vm1196_vm4, %v1182_v10 }
 0x91e   :  { %1560 = vmatmul.mubr.msk.f32.vlgmr.msra.gmra.mxu0 %vm1196_vm4, %v1183_v18 }
 0x9de   :  { %v1561_v23 = vpop.f32.mrf.mxu0 }
 0x9df   :  { %v1275_v25 = vadd.f32 %v1561_v23, %v1420_v21 }
 0x9e0   :  { %v1269_v26 = vpop.f32.mrf.mxu0 }
 0x9e1   :  { %v1368_v28 = vadd.f32 %v1364_v24, %v1275_v25  ;;  %v1270_v5 = vadd.f32 %v1420_v21, %v1269_v26 }
 0x9e3   :  { %1370 = vst [vmem:[#allocation11 + $0x8] sm:$0xff] %v1368_v28  ;;  %v1367_v29 = vadd.f32 %v1359_v27, %v1270_v5 }
 0x9e5   :  { %1369 = vst [vmem:[#allocation11] sm:$0xff] %v1367_v29 }
 0x9e6   :  { %1733 = shalt.err (!%p1730_p1)
}
 0x9e7   :  { %1382 = dma.vmem_to_hbm [thread:$0]  %s1377_s26, 256, %s1973_s8, [#allocation4], %s1752_s10, %s1752_s10, %s1753_s11  }
 0x9e8   :  { %1748 = dma.done.wait [#allocation4], 256  }
 0x9e9   :  { %1749 = vsyncadd [#allocation4], 4294967040 }
 0x9ea   :  { %1386 = vsyncpa [#allocation3], 1 }
 0x9eb   :  { %1387 = vsyncpa [#allocation6], 1 }
 0x9ec   :  { %1388 = vsyncpa [#allocation9], 1 }
 0x9ed   :  { %1389 = vsyncpa [#allocation4], 1 }

</bundles_post_ra>
